<compile_context>
chip_gen: v6e
topology: v6e:2x2x1
jax: 0.10.0
libtpu: 0.0.40
codegen_flags: <defaults>
</compile_context>

<pallas_src>
import functools

import jax
import jax.numpy as jnp
from jax.experimental import pallas as pl
from jax.experimental.pallas import tpu as pltpu

LN_EPS = 1e-5  # PyTorch nn.LayerNorm default


def _round_up(n, m):
    return ((n + m - 1) // m) * m


def _block_vmem_bytes(shape, dtype):
    """Bytes a (..., R, C) block occupies in VMEM, padded to its (sublane, 128) tile."""
    itemsize = jnp.dtype(dtype).itemsize
    sub_q = 8 * max(1, 4 // itemsize)  # 8 sublanes f32, 16 bf16, 32 int8
    r = _round_up(shape[-2], sub_q) if len(shape) >= 2 else sub_q
    c = _round_up(shape[-1], 128)
    lead = 1
    for s in shape[:-2]:
        lead *= int(s)
    return lead * r * c * itemsize


def _vmem_capacity_bytes():
    try:
        return int(pltpu.get_tpu_info().vmem_capacity_bytes)
    except Exception:
        return 64 << 20  # conservative default (v7x per-TC VMEM)


def _device_kind():
    try:
        return jax.devices()[0].device_kind.lower()
    except Exception:
        return ""


def prenorm_linear_kernel(x_ref, gamma_ref, beta_ref, w_ref, b_ref, o_ref,
                          y_ref, *, d_true):
    """Produce one (tm, tn) tile of Linear(LayerNorm(x)).

    x_ref:     (tm, Dp)  input rows (Dp = padded hidden dim)
    gamma_ref: (1, Dp)   f32 LayerNorm scale (zero-padded)
    beta_ref:  (1, Dp)   f32 LayerNorm shift (zero-padded)
    w_ref:     (Dp, tn)  weight tile (matmul dtype, zero-padded)
    b_ref:     (1, tn)   f32 bias tile (zero-padded)
    o_ref:     (tm, tn)  output tile
    y_ref:     (tm, Dp)  VMEM scratch caching the normalized rows (matmul dtype)
    """
    j = pl.program_id(1)

    # LayerNorm once per row block; cached in VMEM and reused for all Dout tiles.
    @pl.when(j == 0)
    def _():
        x = x_ref[...].astype(jnp.float32)                 # (tm, Dp)
        dp = x.shape[-1]
        inv_d = jnp.float32(1.0 / d_true)
        mean = jnp.sum(x, axis=-1, keepdims=True) * inv_d  # padded lanes are 0
        centered = x - mean
        if d_true != dp:                                   # static: mask padded lanes
            lane = jax.lax.broadcasted_iota(jnp.int32, x.shape, 1)
            centered = jnp.where(lane < d_true, centered, 0.0)
        var = jnp.sum(centered * centered, axis=-1, keepdims=True) * inv_d
        xn = centered * jax.lax.rsqrt(var + LN_EPS)
        y = xn * gamma_ref[...] + beta_ref[...]            # gamma/beta already f32
        y_ref[...] = y.astype(y_ref.dtype)                 # store in matmul dtype

    # MXU matmul in weight dtype (bf16 native path when weights are bf16),
    # f32 accumulation.
    out = jnp.dot(y_ref[...], w_ref[...], preferred_element_type=jnp.float32)
    out = out + b_ref[...]                                 # bias already f32
    o_ref[...] = out.astype(o_ref.dtype)


def prenorm_linear(x, gamma, beta, w, b, *, mxu_dtype=None):
    """PreNorm(dim, Linear(dim, dim_out)) forward.  x: (B, S, D)."""
    B, S, D = x.shape
    Dout = w.shape[1]
    rows = B * S

    mxu_dt = jnp.dtype(mxu_dtype) if mxu_dtype is not None else jnp.dtype(w.dtype)

    # Lane-dense padding of hidden dims to multiples of 128.
    Dp = _round_up(D, 128)
    Np = _round_up(Dout, 128)
    rows_r = _round_up(rows, 8)

    xb = jnp.dtype(x.dtype).itemsize
    wb = mxu_dt.itemsize
    ob = jnp.dtype(x.dtype).itemsize

    # Generation-aware VMEM budget (~96 MiB on v5e/v6e, ~48 MiB on v7x).
    vmem_cap = _vmem_capacity_bytes()
    budget = int(vmem_cap * 0.75)
    headroom = 8 << 20  # Mosaic internal scratch / output staging

    def vmem_needed(tm_, tn_):
        need = 0
        need += 2 * _block_vmem_bytes((tm_, Dp), x.dtype)         # x (double-buffered)
        need += 2 * _block_vmem_bytes((Dp, tn_), mxu_dt)          # weight
        need += 2 * 2 * _block_vmem_bytes((1, Dp), jnp.float32)   # gamma + beta
        need += 2 * _block_vmem_bytes((1, tn_), jnp.float32)      # bias
        need += 2 * _block_vmem_bytes((tm_, tn_), x.dtype)        # output
        need += _block_vmem_bytes((tm_, Dp), mxu_dt)              # y scratch (persistent)
        return need

    # ---- tile selection ----------------------------------------------------
    tm = tn = None
    weight_resident = False

    # 1) Weight-resident fast path: tn = Np -> single Dout step, constant weight
    #    block index, W DMA'd into VMEM exactly once and reused for every row block.
    for cand in sorted({min(t, rows_r) for t in (256, 128, 64, 32, 16, 8)},
                       reverse=True):
        if vmem_needed(cand, Np) + headroom <= budget:
            tm, tn, weight_resident = cand, Np, True
            break

    # 2) Streaming path: weight re-read once per row block -> push tm toward the
    #    per-generation roofline (v5e saturates at ~256; v6e/v7x want ~512),
    #    shrinking tm (not tn) if VMEM does not allow it.
    if tm is None:
        kind = _device_kind()
        tm_target = 256 if "v5" in kind else 512
        tm_cands = sorted(
            {min(t, rows_r)
             for t in (768, 640, 512, 384, 256, 192, 128, 64, 32, 16, 8)
             if t <= tm_target} | {min(tm_target, rows_r)},
            reverse=True)
        for tn_cand in sorted({min(256, Np), 128}, reverse=True):
            for tm_cand in tm_cands:
                if vmem_needed(tm_cand, tn_cand) + headroom <= budget:
                    tm, tn = tm_cand, tn_cand
                    break
            if tm is not None:
                break

    if tm is None:  # pathological fallback: smallest lane-dense tiles
        tm, tn = min(8, rows_r), 128

    rows_p = _round_up(rows, tm)
    Np_pad = _round_up(Np, tn)

    x2 = jnp.pad(x.reshape(rows, D), ((0, rows_p - rows), (0, Dp - D)))
    gamma_p = jnp.pad(gamma.astype(jnp.float32).reshape(1, D),
                      ((0, 0), (0, Dp - D)))
    beta_p = jnp.pad(beta.astype(jnp.float32).reshape(1, D),
                     ((0, 0), (0, Dp - D)))
    w_p = jnp.pad(w.astype(mxu_dt), ((0, Dp - D), (0, Np_pad - Dout)))
    b_p = jnp.pad(b.astype(jnp.float32).reshape(1, Dout),
                  ((0, 0), (0, Np_pad - Dout)))

    vmem_limit = int(min(max(vmem_needed(tm, tn) + headroom, 32 << 20), budget))

    n_weight_reads = 1 if weight_resident else rows_p // tm
    cost = pl.CostEstimate(
        flops=int(2 * rows_p * Dp * Np_pad),
        transcendentals=int(rows_p),  # one rsqrt per row
        bytes_accessed=int(rows_p * Dp * xb
                           + n_weight_reads * Dp * Np_pad * wb
                           + rows_p * Np_pad * ob
                           + 2 * Dp * 4 + Np_pad * 4),
    )

    kernel = functools.partial(prenorm_linear_kernel, d_true=D)

    out = pl.pallas_call(
        kernel,
        out_shape=jax.ShapeDtypeStruct((rows_p, Np_pad), x.dtype),
        grid_spec=pltpu.PrefetchScalarGridSpec(
            num_scalar_prefetch=0,
            grid=(rows_p // tm, Np_pad // tn),
            in_specs=[
                pl.BlockSpec((tm, Dp), lambda i, j: (i, 0)),   # x row block
                pl.BlockSpec((1, Dp), lambda i, j: (0, 0)),    # gamma (f32)
                pl.BlockSpec((1, Dp), lambda i, j: (0, 0)),    # beta  (f32)
                pl.BlockSpec((Dp, tn), lambda i, j: (0, j)),   # weight tile
                pl.BlockSpec((1, tn), lambda i, j: (0, j)),    # bias tile (f32)
            ],
            out_specs=pl.BlockSpec((tm, tn), lambda i, j: (i, j)),
            scratch_shapes=[pltpu.VMEM((tm, Dp), mxu_dt)],     # cached normalized y
        ),
        compiler_params=pltpu.CompilerParams(
            # Row axis is embarrassingly parallel (megacore / 2-TC sharding);
            # Dout axis is "arbitrary" because it reuses the y scratch.
            dimension_semantics=("parallel", "arbitrary"),
            vmem_limit_bytes=vmem_limit,
        ),
        cost_estimate=cost,
    )(x2, gamma_p, beta_p, w_p, b_p)

    return out[:rows, :Dout].reshape(B, S, Dout)


def prenorm_linear_ref(x, gamma, beta, w, b):
    """Pure-JAX reference matching torch: fn(LayerNorm(x)), fn = Linear."""
    xf = x.astype(jnp.float32)
    mean = jnp.mean(xf, axis=-1, keepdims=True)
    var = jnp.mean((xf - mean) ** 2, axis=-1, keepdims=True)
    y = (xf - mean) * jax.lax.rsqrt(var + LN_EPS)
    y = y * gamma.astype(jnp.float32).reshape(1, 1, -1) \
        + beta.astype(jnp.float32).reshape(1, 1, -1)
    y = y.astype(w.dtype)
    out = jnp.einsum("bsd,de->bse", y, w, preferred_element_type=jnp.float32)
    out = out + b.astype(jnp.float32).reshape(1, 1, -1)
    return out.astype(x.dtype)


if __name__ == "__main__":
    key = jax.random.PRNGKey(0)
    k1, k2, k3, k4, k5 = jax.random.split(key, 5)

    # --- test 1: f32, non-128 hidden dim (exercises the padded/masked path) ---
    B, S, D = 2, 8, 32
    x = jax.random.normal(k1, (B, S, D), dtype=jnp.float32)
    gamma = (1.0 + 0.1 * jax.random.normal(k2, (1, D))).astype(jnp.float32)
    beta = (0.1 * jax.random.normal(k3, (1, D))).astype(jnp.float32)
    w = (jax.random.normal(k4, (D, D)) / jnp.sqrt(D)).astype(jnp.float32)
    b = (0.1 * jax.random.normal(k5, (1, D))).astype(jnp.float32)

    out = prenorm_linear(x, gamma, beta, w, b)
    jax.block_until_ready(out)
    ref = prenorm_linear_ref(x, gamma, beta, w, b)
    assert out.shape == (B, S, D)
    assert jnp.allclose(out, ref, atol=1e-4, rtol=1e-4), "f32 mismatch vs reference"

    # --- test 2: bf16 weights/activations, lane-dense D (native MXU path) ---
    D2 = 128
    x2 = jax.random.normal(k1, (B, S, D2), dtype=jnp.float32).astype(jnp.bfloat16)
    gamma2 = (1.0 + 0.1 * jax.random.normal(k2, (1, D2))).astype(jnp.float32)
    beta2 = (0.1 * jax.random.normal(k3, (1, D2))).astype(jnp.float32)
    w2 = (jax.random.normal(k4, (D2, D2)) / jnp.sqrt(D2)).astype(jnp.bfloat16)
    b2 = (0.1 * jax.random.normal(k5, (1, D2))).astype(jnp.float32)

    out2 = prenorm_linear(x2, gamma2, beta2, w2, b2)
    jax.block_until_ready(out2)
    ref2 = prenorm_linear_ref(x2, gamma2, beta2, w2, b2)
    assert out2.shape == (B, S, D2)
    assert jnp.allclose(out2.astype(jnp.float32), ref2.astype(jnp.float32),
                        atol=3e-2, rtol=3e-2), "bf16 mismatch vs reference"

    # --- test 3: rectangular Linear (dim != dim_out), f32, non-dense dims ---
    D3, Dout3 = 48, 80
    x3 = jax.random.normal(k1, (B, S, D3), dtype=jnp.float32)
    gamma3 = (1.0 + 0.1 * jax.random.normal(k2, (1, D3))).astype(jnp.float32)
    beta3 = (0.1 * jax.random.normal(k3, (1, D3))).astype(jnp.float32)
    w3 = (jax.random.normal(k4, (D3, Dout3)) / jnp.sqrt(D3)).astype(jnp.float32)
    b3 = (0.1 * jax.random.normal(k5, (1, Dout3))).astype(jnp.float32)

    out3 = prenorm_linear(x3, gamma3, beta3, w3, b3)
    jax.block_until_ready(out3)
    ref3 = prenorm_linear_ref(x3, gamma3, beta3, w3, b3)
    assert out3.shape == (B, S, Dout3)
    assert jnp.allclose(out3, ref3, atol=1e-4, rtol=1e-4), "rect mismatch vs reference"

    print("KERNEL_OK")
</pallas_src>

<mosaic_0001>
module attributes {stable_mosaic.version = 11 : i64} {
  func.func @prenorm_linear_kernel(%arg0: i32, %arg1: i32, %arg2: memref<16x128xf32, #tpu.memory_space<vmem>>, %arg3: memref<1x128xf32, #tpu.memory_space<vmem>>, %arg4: memref<1x128xf32, #tpu.memory_space<vmem>>, %arg5: memref<128x128xf32, #tpu.memory_space<vmem>>, %arg6: memref<1x128xf32, #tpu.memory_space<vmem>>, %arg7: memref<16x128xf32, #tpu.memory_space<vmem>>, %arg8: memref<16x128xf32, #tpu.memory_space<vmem>>) attributes {dimension_semantics = [#tpu.dimension_semantics<parallel>, #tpu.dimension_semantics<arbitrary>], iteration_bounds = array<i64: 1, 1>, scalar_prefetch = 0 : i64, scratch_operands = 1 : i64, tpu.core_type = #tpu.core_type<tc>, window_params = [{transform_indices = @transform_0, window_bounds = array<i64: 16, 128>}, {pipeline_mode = #tpu.pipeline_mode<synchronous>, transform_indices = @transform_1, window_bounds = array<i64: 1, 128>}, {pipeline_mode = #tpu.pipeline_mode<synchronous>, transform_indices = @transform_2, window_bounds = array<i64: 1, 128>}, {transform_indices = @transform_3, window_bounds = array<i64: 128, 128>}, {transform_indices = @transform_4, window_bounds = array<i64: 1, 128>}, {transform_indices = @transform_5, window_bounds = array<i64: 16, 128>}]} {
    %c0_i32 = arith.constant 0 : i32
    %0 = arith.cmpi eq, %arg1, %c0_i32 : i32
    %1 = arith.extui %0 : i1 to i32
    %c0_i32_0 = arith.constant 0 : i32
    %2 = arith.cmpi ne, %1, %c0_i32_0 : i32
    scf.if %2 {
      %c0_8 = arith.constant 0 : index
      %c0_9 = arith.constant 0 : index
      %10 = vector.load %arg2[%c0_8, %c0_9] : memref<16x128xf32, #tpu.memory_space<vmem>>, vector<16x128xf32>
      %cst_10 = arith.constant dense<0.000000e+00> : vector<16xf32>
      %11 = vector.multi_reduction <add>, %10, %cst_10 [1] : vector<16x128xf32> to vector<16xf32>
      %12 = vector.shape_cast %11 : vector<16xf32> to vector<16x1xf32>
      %cst_11 = arith.constant 3.125000e-02 : f32
      %13 = vector.broadcast %cst_11 : f32 to vector<16x1xf32>
      %14 = arith.mulf %12, %13 : vector<16x1xf32>
      %15 = vector.broadcast %14 : vector<16x1xf32> to vector<16x128xf32>
      %16 = arith.subf %10, %15 : vector<16x128xf32>
      %17 = tpu.iota {dimensions = array<i32: 1>} : vector<16x128xi32>
      %c32_i32 = arith.constant 32 : i32
      %18 = vector.broadcast %c32_i32 : i32 to vector<16x128xi32>
      %19 = arith.cmpi slt, %17, %18 : vector<16x128xi32>
      %cst_12 = arith.constant 0.000000e+00 : f32
      %20 = vector.broadcast %cst_12 : f32 to vector<16x128xf32>
      %21 = arith.select %19, %16, %20 : vector<16x128xi1>, vector<16x128xf32>
      %22 = arith.mulf %21, %21 : vector<16x128xf32>
      %cst_13 = arith.constant dense<0.000000e+00> : vector<16xf32>
      %23 = vector.multi_reduction <add>, %22, %cst_13 [1] : vector<16x128xf32> to vector<16xf32>
      %24 = vector.shape_cast %23 : vector<16xf32> to vector<16x1xf32>
      %cst_14 = arith.constant 3.125000e-02 : f32
      %25 = vector.broadcast %cst_14 : f32 to vector<16x1xf32>
      %26 = arith.mulf %24, %25 : vector<16x1xf32>
      %cst_15 = arith.constant 9.99999974E-6 : f32
      %27 = vector.broadcast %cst_15 : f32 to vector<16x1xf32>
      %28 = arith.addf %26, %27 : vector<16x1xf32>
      %29 = math.rsqrt %28 : vector<16x1xf32>
      %30 = vector.broadcast %29 : vector<16x1xf32> to vector<16x128xf32>
      %31 = arith.mulf %21, %30 : vector<16x128xf32>
      %c0_16 = arith.constant 0 : index
      %c0_17 = arith.constant 0 : index
      %32 = vector.load %arg3[%c0_16, %c0_17] : memref<1x128xf32, #tpu.memory_space<vmem>>, vector<1x128xf32>
      %33 = vector.broadcast %32 : vector<1x128xf32> to vector<16x128xf32>
      %34 = arith.mulf %31, %33 : vector<16x128xf32>
      %c0_18 = arith.constant 0 : index
      %c0_19 = arith.constant 0 : index
      %35 = vector.load %arg4[%c0_18, %c0_19] : memref<1x128xf32, #tpu.memory_space<vmem>>, vector<1x128xf32>
      %36 = vector.broadcast %35 : vector<1x128xf32> to vector<16x128xf32>
      %37 = arith.addf %34, %36 : vector<16x128xf32>
      %c0_20 = arith.constant 0 : index
      %c0_21 = arith.constant 0 : index
      %38 = vector.load %arg8[%c0_20, %c0_21] : memref<16x128xf32, #tpu.memory_space<vmem>>, vector<16x128xf32>
      tpu.vector_store %arg8[%c0_20, %c0_21], %37 {strides = array<i32>} : memref<16x128xf32, #tpu.memory_space<vmem>>, vector<16x128xf32>,
    } else {
    }
    %c0 = arith.constant 0 : index
    %c0_1 = arith.constant 0 : index
    %3 = vector.load %arg8[%c0, %c0_1] : memref<16x128xf32, #tpu.memory_space<vmem>>, vector<16x128xf32>
    %c0_2 = arith.constant 0 : index
    %c0_3 = arith.constant 0 : index
    %4 = vector.load %arg5[%c0_2, %c0_3] : memref<128x128xf32, #tpu.memory_space<vmem>>, vector<128x128xf32>
    %cst = arith.constant dense<0.000000e+00> : vector<16x128xf32>
    %5 = tpu.matmul %3, %4, %cst {dimension_numbers = #tpu.dot_dimension_numbers<[1], [0], [0], [1], [0, 0, 1, 1], [], []>} : vector<16x128xf32>, vector<128x128xf32>, vector<16x128xf32> -> vector<16x128xf32>
    %c0_4 = arith.constant 0 : index
    %c0_5 = arith.constant 0 : index
    %6 = vector.load %arg6[%c0_4, %c0_5] : memref<1x128xf32, #tpu.memory_space<vmem>>, vector<1x128xf32>
    %7 = vector.broadcast %6 : vector<1x128xf32> to vector<16x128xf32>
    %8 = arith.addf %5, %7 : vector<16x128xf32>
    %c0_6 = arith.constant 0 : index
    %c0_7 = arith.constant 0 : index
    %9 = vector.load %arg7[%c0_6, %c0_7] : memref<16x128xf32, #tpu.memory_space<vmem>>, vector<16x128xf32>
    tpu.vector_store %arg7[%c0_6, %c0_7], %8 {strides = array<i32>} : memref<16x128xf32, #tpu.memory_space<vmem>>, vector<16x128xf32>,
    return
  }
  func.func @transform_0(%arg0: i32, %arg1: i32) -> (i32, i32) {
    %c0_i32 = arith.constant 0 : i32
    %c0_i32_0 = arith.constant 0 : i32
    return %arg0, %c0_i32 : i32, i32
  }
  func.func @transform_1(%arg0: i32, %arg1: i32) -> (i32, i32) {
    %c0_i32 = arith.constant 0 : i32
    %c0_i32_0 = arith.constant 0 : i32
    %c0_i32_1 = arith.constant 0 : i32
    return %c0_i32, %c0_i32_0 : i32, i32
  }
  func.func @transform_2(%arg0: i32, %arg1: i32) -> (i32, i32) {
    %c0_i32 = arith.constant 0 : i32
    %c0_i32_0 = arith.constant 0 : i32
    %c0_i32_1 = arith.constant 0 : i32
    return %c0_i32, %c0_i32_0 : i32, i32
  }
  func.func @transform_3(%arg0: i32, %arg1: i32) -> (i32, i32) {
    %c0_i32 = arith.constant 0 : i32
    %c0_i32_0 = arith.constant 0 : i32
    return %c0_i32, %arg1 : i32, i32
  }
  func.func @transform_4(%arg0: i32, %arg1: i32) -> (i32, i32) {
    %c0_i32 = arith.constant 0 : i32
    %c0_i32_0 = arith.constant 0 : i32
    return %c0_i32, %arg1 : i32, i32
  }
  func.func @transform_5(%arg0: i32, %arg1: i32) -> (i32, i32) {
    %c0_i32 = arith.constant 0 : i32
    return %arg0, %arg1 : i32, i32
  }
}

</mosaic_0001>

<bundles_post_ra>
// kernel: tpu_custom_call.1
= control target key start
LH: loop header
LB: loop body
LE: loop exit
PB: predicated region body
PF: predicated region fallthrough
CT: control target
= control target key end

     0   :  { %10 = vsyncpa [#allocation4], 0  ;;  %s415_s0 = inlined_call_operand.hbm [shape: f32[16,128], index: 0, kind: input, shape index: {}]   ;;  %s416_s1 = inlined_call_operand.vmem [shape: f32[1,128], index: 1, kind: input, shape index: {}]   ;;  %s417_s2 = inlined_call_operand.vmem [shape: f32[1,128], index: 2, kind: input, shape index: {}]   ;;  %s418_s3 = inlined_call_operand.hbm [shape: f32[128,128], index: 3, kind: input, shape index: {}]   ;;  %s419_s4 = inlined_call_operand.vmem [shape: f32[1,128], index: 4, kind: input, shape index: {}]   ;;  %s420_s5 = inlined_call_operand.hbm [shape: f32[16,128], index: 5, kind: output, shape index: {}]  }
   0x1   :  { %11 = vsyncpa [#allocation7], 0 }
   0x2   :  { %12 = vsyncpa [#allocation5], 0  ;;  %s353_s18 = smov [#allocation3]  }
   0x3   :  { %s18_s19 = sshll.u32 %s353_s18, 4  ;;  %s19_s19 = int_to_ptr.vmem [resolvable:$true] %s18_s19 }
   0x4   :  { %s295_s20 = scalar_lea.vmem %s19_s19, 256  ;;  %p300_p1 = scmp.lt.s32.totalorder %s19_s19, %s19_s19 }
   0x5   :  { %p296_p0 = scmp.ne.s32.totalorder %s19_s19, %s295_s20  ;;  %p301_p2 = scmp.lt.s32.totalorder %s295_s20, %s295_s20 }
   0x7   :  { %p302_p3 = por %p301_p2, %p300_p1 }
   0x9   :  { %p303_p4 = pnand %p302_p3, %p296_p0 }
   0xb   :  { %306 = shalt.err (!%p303_p4)
}
   0xc   :  { %s354_s21 = smov 128   ;;  %s355_s22 = smov 8  }
   0xd   :  { %24 = dma.hbm_to_vmem [thread:$0]  %s415_s0, 256, %s19_s19, [#allocation4], %s354_s21, %s354_s21, %s355_s22  }
   0xe   :  { %s356_s25 = smov [#allocation6]  }
   0xf   :  { %s34_s26 = sshll.u32 %s356_s25, 4  ;;  %s35_s26 = int_to_ptr.vmem [resolvable:$true] %s34_s26 }
  0x10   :  { %s315_s27 = scalar_lea.vmem %s35_s26, 2048  ;;  %p320_p6 = scmp.lt.s32.totalorder %s35_s26, %s35_s26 }
  0x11   :  { %p316_p5 = scmp.ne.s32.totalorder %s35_s26, %s315_s27  ;;  %p321_p7 = scmp.lt.s32.totalorder %s315_s27, %s315_s27 }
  0x13   :  { %p322_p8 = por %p321_p7, %p320_p6 }
  0x15   :  { %p323_p9 = pnand %p322_p8, %p316_p5 }
  0x17   :  { %326 = shalt.err (!%p323_p9)
}
  0x18   :  { %40 = dma.hbm_to_vmem [thread:$0]  %s418_s3, 2048, %s35_s26, [#allocation7], %s354_s21, %s354_s21, %s355_s22  }
  0x19   :  { %347 = dma.done.wait [#allocation4], 256  }
  0x1a   :  { %348 = vsyncadd [#allocation4], 4294967040 }
  0x1b   :  { %349 = dma.done.wait [#allocation7], 2048  }
  0x1c   :  { %350 = vsyncadd [#allocation7], 4294965248  ;;  %v53_v0 = vld [vmem:[#allocation3] sm:$0xff]  ;;  %v54_v1 = vld [vmem:[#allocation3 + $0x8] sm:$0xff]  ;;  %v63_v4 = vlaneseq  ;;  %s357_s9 = smov [#allocation8]  }
  0x1d   :  { %55 = vadd.xlane.f32.xlu0 %v53_v0  ;;  %v119_v2 = vld [vmem:[#allocation6 + $0x78] sm:$0xff]  ;;  %v118_v3 = vld [vmem:[#allocation6 + $0x70] sm:$0xff]  ;;  %v117_v16 = vld [vmem:[#allocation6 + $0x68] sm:$0xff] }
  0x1e   :  { %243 = vmatprep.subr.mxu0 %v119_v2  ;;  %v64_v5 = vand.u32 127, %v63_v4  ;;  %v116_v17 = vld [vmem:[#allocation6 + $0x60] sm:$0xff]  ;;  %v115_v18 = vld [vmem:[#allocation6 + $0x58] sm:$0xff]  ;;  %v114_v19 = vld [vmem:[#allocation6 + $0x50] sm:$0xff] }
  0x1f   :  { %244 = vmatpush3.msra.mxu0 %v119_v2  ;;  %v113_v20 = vld [vmem:[#allocation6 + $0x48] sm:$0xff]  ;;  %v112_v21 = vld [vmem:[#allocation6 + $0x40] sm:$0xff]  ;;  %v111_v22 = vld [vmem:[#allocation6 + $0x38] sm:$0xff] }
  0x20   :  { %245 = vmatprep.subr.mxu0 %v118_v3  ;;  %vm65_vm0 = vcmp.lt.s32.totalorder %v64_v5, 32  ;;  %v110_v23 = vld [vmem:[#allocation6 + $0x30] sm:$0xff]  ;;  %v109_v24 = vld [vmem:[#allocation6 + $0x28] sm:$0xff]  ;;  %v108_v25 = vld [vmem:[#allocation6 + $0x20] sm:$0xff] }
  0x21   :  { %57 = vadd.xlane.f32.xlu0 %v54_v1  ;;  %246 = vmatpush3.msra.mxu0 %v118_v3  ;;  %v107_v26 = vld [vmem:[#allocation6 + $0x18] sm:$0xff]  ;;  %v106_v27 = vld [vmem:[#allocation6 + $0x10] sm:$0xff]  ;;  %v105_v28 = vld [vmem:[#allocation6 + $0x8] sm:$0xff] }
  0x22   :  { %247 = vmatprep.subr.mxu0 %v117_v16  ;;  %v104_v29 = vld [vmem:[#allocation6] sm:$0xff]  ;;  %v222_v37 = vld [vmem:[%s416_s1] ss:$0 sm:$0xff]  ;;  %s209_s1 = sshll.u32 %s357_s9, 4  ;;  %s210_s1 = int_to_ptr.vmem [resolvable:$true] %s209_s1 }
  0x23   :  { %248 = vmatpush3.msra.mxu0 %v117_v16  ;;  %v223_v39 = vld [vmem:[%s417_s2] ss:$0 sm:$0xff]  ;;  %s327_s2 = scalar_lea.vmem %s210_s1, 256  ;;  %p332_p11 = scmp.lt.s32.totalorder %s210_s1, %s210_s1 }
  0x24   :  { %249 = vmatprep.subr.mxu0 %v116_v17  ;;  %v224_v46 = vld [vmem:[%s419_s4] ss:$0 sm:$0xff]  ;;  %p328_p10 = scmp.ne.s32.totalorder %s210_s1, %s327_s2  ;;  %p333_p12 = scmp.lt.s32.totalorder %s327_s2, %s327_s2 }
  0x25   :  { %250 = vmatpush3.msra.mxu0 %v116_v17 }
  0x26   :  { %251 = vmatprep.subr.mxu0 %v115_v18  ;;  %p334_p13 = por %p333_p12, %p332_p11 }
  0x27   :  { %252 = vmatpush3.msra.mxu0 %v115_v18 }
  0x28   :  { %253 = vmatprep.subr.mxu0 %v114_v19  ;;  %p335_p0 = pnand %p334_p13, %p328_p10 }
  0x29   :  { %254 = vmatpush3.msra.mxu0 %v114_v19 }
  0x2a   :  { %255 = vmatprep.subr.mxu0 %v113_v20 }
  0x2b   :  { %256 = vmatpush3.msra.mxu0 %v113_v20 }
  0x2c   :  { %257 = vmatprep.subr.mxu0 %v112_v21 }
  0x2d   :  { %258 = vmatpush3.msra.mxu0 %v112_v21 }
  0x2e   :  { %259 = vmatprep.subr.mxu0 %v111_v22 }
  0x2f   :  { %260 = vmatpush3.msra.mxu0 %v111_v22 }
  0x30   :  { %261 = vmatprep.subr.mxu0 %v110_v23 }
  0x31   :  { %262 = vmatpush3.msra.mxu0 %v110_v23 }
  0x32   :  { %263 = vmatprep.subr.mxu0 %v109_v24 }
  0x33   :  { %264 = vmatpush3.msra.mxu0 %v109_v24 }
  0x34   :  { %265 = vmatprep.subr.mxu0 %v108_v25 }
  0x35   :  { %266 = vmatpush3.msra.mxu0 %v108_v25 }
  0x36   :  { %267 = vmatprep.subr.mxu0 %v107_v26 }
  0x37   :  { %268 = vmatpush3.msra.mxu0 %v107_v26 }
  0x38   :  { %269 = vmatprep.subr.mxu0 %v106_v27 }
  0x39   :  { %270 = vmatpush3.msra.mxu0 %v106_v27 }
  0x3a   :  { %271 = vmatprep.subr.mxu0 %v105_v28 }
  0x3b   :  { %272 = vmatpush3.msra.mxu0 %v105_v28 }
  0x3c   :  { %273 = vmatprep.subr.mxu0 %v104_v29 }
  0x3d   :  { %274 = vmatpush3.msra.mxu0 %v104_v29 }
  0xa6   :  { %v56_v6 = vpop.xlane.xlu0 %55 }
  0xa7   :  { %v59_v7 = vmul.f32 0.03125, %v56_v6 }
  0xa9   :  { %v61_v8 = vsub.f32 %v53_v0, %v59_v7 }
  0xaa   :  { %v58_v9 = vpop.xlane.xlu0 %57 }
  0xab   :  { %v60_v10 = vmul.f32 0.03125, %v58_v9  ;;  %v66_v11 = vsel %vm65_vm0, %v61_v8, 0.0 }
  0xac   :  { %v68_v12 = vmul.f32 %v66_v11, %v66_v11 }
  0xad   :  { %v62_v13 = vsub.f32 %v54_v1, %v60_v10 }
  0xae   :  { %70 = vadd.xlane.f32.xlu1 %v68_v12 }
  0xaf   :  { %v67_v14 = vsel %vm65_vm0, %v62_v13, 0.0 }
  0xb0   :  { %v69_v15 = vmul.f32 %v67_v14, %v67_v14 }
  0xb2   :  { %72 = vadd.xlane.f32.xlu1 %v69_v15 }
 0x137   :  { %v71_v30 = vpop.xlane.xlu1 %70 }
 0x138   :  { %v74_v31 = vmul.f32 0.03125, %v71_v30 }
 0x13a   :  { %v76_v32 = vadd.f32 1e-05, %v74_v31 }
 0x13b   :  { %v73_v33 = vpop.xlane.xlu1 %72 }
 0x13c   :  { %283 = vrsqrt.f32 %v76_v32  ;;  %v75_v34 = vmul.f32 0.03125, %v73_v33 }
 0x13e   :  { %v77_v35 = vadd.f32 1e-05, %v75_v34 }
 0x140   :  { %285 = vrsqrt.f32 %v77_v35 }
 0x149   :  { %v284_v36 = vpop.eup %283 }
 0x14a   :  { %v80_v38 = vmul.f32 %v284_v36, %v66_v11 }
 0x14c   :  { %v89_v40 = vmul.f32 %v222_v37, %v80_v38 }
 0x14d   :  { %v286_v41 = vpop.eup %285 }
 0x14e   :  { %v81_v42 = vmul.f32 %v286_v41, %v67_v14  ;;  %v98_v43 = vadd.f32 %v223_v39, %v89_v40 }
 0x150   :  { %v90_v44 = vmul.f32 %v222_v37, %v81_v42  ;;  %275 = vmatprep.mubr.f32.mxu0 %v98_v43 }
 0x152   :  { %v99_v45 = vadd.f32 %v223_v39, %v90_v44 }
 0x154   :  { %276 = vmatmul.mubr.f32.vlgmr.msra.gmra.mxu0 %v99_v45 }
 0x214   :  { %v277_v47 = vpop.f32.mrf.mxu0 }
 0x215   :  { %v199_v48 = vadd.f32 %v277_v47, %v224_v46 }
 0x216   :  { %v193_v49 = vpop.f32.mrf.mxu0 }
 0x217   :  { %203 = vst [vmem:[#allocation8 + $0x8] sm:$0xff] %v199_v48  ;;  %v194_v50 = vadd.f32 %v224_v46, %v193_v49 }
 0x219   :  { %202 = vst [vmem:[#allocation8] sm:$0xff] %v194_v50 }
 0x21a   :  { %338 = shalt.err (!%p335_p0)
}
 0x21b   :  { %215 = dma.vmem_to_hbm [thread:$0]  %s210_s1, 256, %s420_s5, [#allocation5], %s354_s21, %s354_s21, %s355_s22  }
 0x21c   :  { %351 = dma.done.wait [#allocation5], 256  }
 0x21d   :  { %352 = vsyncadd [#allocation5], 4294967040 }
 0x21e   :  { %219 = vsyncpa [#allocation4], 1 }
 0x21f   :  { %220 = vsyncpa [#allocation7], 1 }
 0x220   :  { %221 = vsyncpa [#allocation5], 1 }

</bundles_post_ra>
